<compile_context>
chip_gen: v7x
topology: tpu7x:2x2x1
jax: 0.10.0
libtpu: 0.0.40
codegen_flags: <defaults>
</compile_context>

<pallas_src>
import functools

import jax
import jax.numpy as jnp
from jax.experimental import pallas as pl
from jax.experimental.pallas import tpu as pltpu

C1 = 0.01 ** 2
C2 = 0.03 ** 2
WINDOW_SIZE = 11
LANES = 128
SUBLANES = 8


def _ssim_kernel(ah_ref, aw_ref, x_ref, y_ref, out_ref, *, inv_k, n_ho, n_wo):
    # ah_ref: (Ho_pad, H)  0/1 row-pooling matrix (zero rows past Ho).
    # aw_ref: (W, Wo_pad)  0/1 col-pooling matrix (zero cols past Wo).
    # x_ref / y_ref: (1, H, W) one (n, c) image pair in natural layout.
    ah = ah_ref[...]
    aw = aw_ref[...]
    # Cast inside the kernel so narrow input dtypes are DMA'd narrow.
    x = x_ref[0].astype(jnp.float32)
    y = y_ref[0].astype(jnp.float32)

    def pool(z):
        # avg_pool2d(ws, stride=ws, floor) == (A_h @ z @ A_w) * (1 / ws**2).
        t = jnp.dot(ah, z, precision=jax.lax.Precision.HIGHEST,
                    preferred_element_type=jnp.float32)
        t = jnp.dot(t, aw, precision=jax.lax.Precision.HIGHEST,
                    preferred_element_type=jnp.float32)
        return t * inv_k

    mu1 = pool(x)
    mu2 = pool(y)
    e11 = pool(x * x)
    e22 = pool(y * y)
    e12 = pool(x * y)

    mu1_sq = mu1 * mu1
    mu2_sq = mu2 * mu2
    mu1_mu2 = mu1 * mu2
    sigma1_sq = e11 - mu1_sq
    sigma2_sq = e22 - mu2_sq
    sigma12 = e12 - mu1_mu2

    num = (2.0 * mu1_mu2 + C1) * (2.0 * sigma12 + C2)
    den = (mu1_sq + mu2_sq + C1) * (sigma1_sq + sigma2_sq + C2)
    # approx=False keeps full precision (test tolerance is 1e-5).
    ssim = num * pl.reciprocal(den, approx=False)          # (Ho_pad, Wo_pad)

    # Padded pooling rows/cols have mu = sigma = 0 -> ssim == 1; mask them out
    # so they do not pollute the mean.
    row = jax.lax.broadcasted_iota(jnp.int32, ssim.shape, 0)
    col = jax.lax.broadcasted_iota(jnp.int32, ssim.shape, 1)
    ssim = jnp.where((row < n_ho) & (col < n_wo), ssim, 0.0)

    # One lane-dense partial-sum row per image pair; wrapper reads lane 0.
    out_ref[...] = jnp.full(out_ref.shape, jnp.sum(ssim), jnp.float32)


def ssim_loss(img1, img2, window_size=WINDOW_SIZE):
    ws = window_size
    n, c, h, w = img1.shape
    ho, wo = h // ws, w // ws
    b = n * c

    # Free leading-dim merge; no crop / transpose / pad copies in HBM.
    x = img1.reshape(b, h, w)
    y = img2.reshape(b, h, w)

    # 0/1 pooling matrices.  Output rows/cols are padded to vreg-friendly
    # multiples (sublanes of 8 / lanes of 128) with all-zero weights; rows/cols
    # of the image outside the floor-cropped region also get zero weight
    # (PyTorch avg_pool2d floor semantics).
    ho_p = max(SUBLANES, -(-ho // SUBLANES) * SUBLANES)
    wo_p = max(LANES, -(-wo // LANES) * LANES)
    a_h = (jnp.arange(h, dtype=jnp.int32)[None, :] // ws
           == jnp.arange(ho_p, dtype=jnp.int32)[:, None])
    a_h = (a_h & (jnp.arange(ho_p, dtype=jnp.int32)[:, None] < ho)).astype(jnp.float32)
    a_w = (jnp.arange(w, dtype=jnp.int32)[:, None] // ws
           == jnp.arange(wo_p, dtype=jnp.int32)[None, :])
    a_w = (a_w & (jnp.arange(wo_p, dtype=jnp.int32)[None, :] < wo)).astype(jnp.float32)

    kernel = functools.partial(_ssim_kernel, inv_k=1.0 / float(ws * ws),
                               n_ho=ho, n_wo=wo)

    # TODO(synk): for workloads with many tiny (H, W) images, pack several
    # image pairs per grid step to amortize the ~0.35 us per-step overhead.
    partials = pl.pallas_call(
        kernel,
        out_shape=jax.ShapeDtypeStruct((b, 1, LANES), jnp.float32),
        grid=(b,),
        in_specs=[
            pl.BlockSpec((ho_p, h), lambda i: (0, 0)),     # resident across steps
            pl.BlockSpec((w, wo_p), lambda i: (0, 0)),     # resident across steps
            pl.BlockSpec((1, h, w), lambda i: (i, 0, 0)),
            pl.BlockSpec((1, h, w), lambda i: (i, 0, 0)),
        ],
        out_specs=pl.BlockSpec((1, 1, LANES), lambda i: (i, 0, 0)),
        compiler_params=pltpu.CompilerParams(
            dimension_semantics=("parallel",),
        ),
    )(a_h, a_w, x, y)

    # Mean over the TRUE window count (N*C*Ho*Wo), then 1 - mean.
    return 1.0 - jnp.sum(partials[:, 0, 0]) / (b * ho * wo)


def _ssim_loss_ref(img1, img2, ws=WINDOW_SIZE):
    """Pure-JAX reference matching the PyTorch SSIMLoss.forward semantics."""
    def avg_pool(x):
        n, c, h, w = x.shape
        ho, wo = h // ws, w // ws
        x = x[:, :, : ho * ws, : wo * ws].reshape(n, c, ho, ws, wo, ws)
        return x.mean(axis=(3, 5))

    img1 = img1.astype(jnp.float32)
    img2 = img2.astype(jnp.float32)
    mu1, mu2 = avg_pool(img1), avg_pool(img2)
    mu1_sq, mu2_sq, mu1_mu2 = mu1 ** 2, mu2 ** 2, mu1 * mu2
    sigma1_sq = avg_pool(img1 * img1) - mu1_sq
    sigma2_sq = avg_pool(img2 * img2) - mu2_sq
    sigma12 = avg_pool(img1 * img2) - mu1_mu2
    num = (2 * mu1_mu2 + C1) * (2 * sigma12 + C2)
    den = (mu1_sq + mu2_sq + C1) * (sigma1_sq + sigma2_sq + C2)
    return 1.0 - (num / den).mean()


if __name__ == "__main__":
    key = jax.random.PRNGKey(0)
    k1, k2, k3, k4, k5, k6 = jax.random.split(key, 6)

    # Case 1: small canonical shape; a single pooled window per channel image.
    a1 = jax.random.uniform(k1, (2, 4, 16, 16), dtype=jnp.float32)
    b1 = jax.random.uniform(k2, (2, 4, 16, 16), dtype=jnp.float32)
    l1 = jax.jit(ssim_loss)(a1, b1)
    jax.block_until_ready(l1)
    r1 = _ssim_loss_ref(a1, b1)
    assert jnp.allclose(l1, r1, atol=1e-5, rtol=1e-5), (l1, r1)

    # Case 2: spatial=23 exercises avg_pool2d floor semantics (23 // 11 == 2).
    a2 = jax.random.uniform(k3, (2, 4, 23, 23), dtype=jnp.float32)
    b2 = jax.random.uniform(k4, (2, 4, 23, 23), dtype=jnp.float32)
    l2 = jax.jit(ssim_loss)(a2, b2)
    jax.block_until_ready(l2)
    r2 = _ssim_loss_ref(a2, b2)
    assert jnp.allclose(l2, r2, atol=1e-5, rtol=1e-5), (l2, r2)

    # Case 3: 3x3 window grid per channel image.
    a3 = jax.random.uniform(k5, (2, 3, 34, 34), dtype=jnp.float32)
    b3 = jax.random.uniform(k6, (2, 3, 34, 34), dtype=jnp.float32)
    l3 = jax.jit(ssim_loss)(a3, b3)
    jax.block_until_ready(l3)
    r3 = _ssim_loss_ref(a3, b3)
    assert jnp.allclose(l3, r3, atol=1e-5, rtol=1e-5), (l3, r3)

    print("KERNEL_OK")
</pallas_src>

<mosaic_0001>
module attributes {stable_mosaic.version = 11 : i64} {
  func.func @_ssim_kernel(%arg0: i32, %arg1: memref<8x16xf32, #tpu.memory_space<vmem>>, %arg2: memref<16x128xf32, #tpu.memory_space<vmem>>, %arg3: memref<1x16x16xf32, #tpu.memory_space<vmem>>, %arg4: memref<1x16x16xf32, #tpu.memory_space<vmem>>, %arg5: memref<1x1x128xf32, #tpu.memory_space<vmem>>) attributes {dimension_semantics = [#tpu.dimension_semantics<parallel>], iteration_bounds = array<i64: 8>, scalar_prefetch = 0 : i64, scratch_operands = 0 : i64, tpu.core_type = #tpu.core_type<tc>, window_params = [{pipeline_mode = #tpu.pipeline_mode<synchronous>, transform_indices = @transform_0, window_bounds = array<i64: 8, 16>}, {pipeline_mode = #tpu.pipeline_mode<synchronous>, transform_indices = @transform_1, window_bounds = array<i64: 16, 128>}, {transform_indices = @transform_2, window_bounds = array<i64: 1, 16, 16>}, {transform_indices = @transform_3, window_bounds = array<i64: 1, 16, 16>}, {transform_indices = @transform_4, window_bounds = array<i64: 1, 1, 128>}]} {
    %c0 = arith.constant 0 : index
    %c0_0 = arith.constant 0 : index
    %0 = vector.load %arg1[%c0, %c0_0] : memref<8x16xf32, #tpu.memory_space<vmem>>, vector<8x16xf32>
    %c0_1 = arith.constant 0 : index
    %c0_2 = arith.constant 0 : index
    %1 = vector.load %arg2[%c0_1, %c0_2] : memref<16x128xf32, #tpu.memory_space<vmem>>, vector<16x128xf32>
    %c0_3 = arith.constant 0 : index
    %c0_4 = arith.constant 0 : index
    %c0_5 = arith.constant 0 : index
    %2 = vector.load %arg3[%c0_3, %c0_4, %c0_5] : memref<1x16x16xf32, #tpu.memory_space<vmem>>, vector<1x16x16xf32>
    %3 = vector.shape_cast %2 : vector<1x16x16xf32> to vector<16x16xf32>
    %c0_6 = arith.constant 0 : index
    %c0_7 = arith.constant 0 : index
    %c0_8 = arith.constant 0 : index
    %4 = vector.load %arg4[%c0_6, %c0_7, %c0_8] : memref<1x16x16xf32, #tpu.memory_space<vmem>>, vector<1x16x16xf32>
    %5 = vector.shape_cast %4 : vector<1x16x16xf32> to vector<16x16xf32>
    %cst = arith.constant dense<0.000000e+00> : vector<8x16xf32>
    %6 = tpu.matmul %0, %3, %cst {dimension_numbers = #tpu.dot_dimension_numbers<[1], [0], [0], [1], [0, 0, 1, 1], [], []>, precision = #tpu.contract_precision<fp32>} : vector<8x16xf32>, vector<16x16xf32>, vector<8x16xf32> -> vector<8x16xf32>
    %cst_9 = arith.constant dense<0.000000e+00> : vector<8x128xf32>
    %7 = tpu.matmul %6, %1, %cst_9 {dimension_numbers = #tpu.dot_dimension_numbers<[1], [0], [0], [1], [0, 0, 1, 1], [], []>, precision = #tpu.contract_precision<fp32>} : vector<8x16xf32>, vector<16x128xf32>, vector<8x128xf32> -> vector<8x128xf32>
    %cst_10 = arith.constant 0.00826446246 : f32
    %8 = vector.broadcast %cst_10 : f32 to vector<8x128xf32>
    %9 = arith.mulf %7, %8 : vector<8x128xf32>
    %cst_11 = arith.constant dense<0.000000e+00> : vector<8x16xf32>
    %10 = tpu.matmul %0, %5, %cst_11 {dimension_numbers = #tpu.dot_dimension_numbers<[1], [0], [0], [1], [0, 0, 1, 1], [], []>, precision = #tpu.contract_precision<fp32>} : vector<8x16xf32>, vector<16x16xf32>, vector<8x16xf32> -> vector<8x16xf32>
    %cst_12 = arith.constant dense<0.000000e+00> : vector<8x128xf32>
    %11 = tpu.matmul %10, %1, %cst_12 {dimension_numbers = #tpu.dot_dimension_numbers<[1], [0], [0], [1], [0, 0, 1, 1], [], []>, precision = #tpu.contract_precision<fp32>} : vector<8x16xf32>, vector<16x128xf32>, vector<8x128xf32> -> vector<8x128xf32>
    %cst_13 = arith.constant 0.00826446246 : f32
    %12 = vector.broadcast %cst_13 : f32 to vector<8x128xf32>
    %13 = arith.mulf %11, %12 : vector<8x128xf32>
    %14 = arith.mulf %3, %3 : vector<16x16xf32>
    %cst_14 = arith.constant dense<0.000000e+00> : vector<8x16xf32>
    %15 = tpu.matmul %0, %14, %cst_14 {dimension_numbers = #tpu.dot_dimension_numbers<[1], [0], [0], [1], [0, 0, 1, 1], [], []>, precision = #tpu.contract_precision<fp32>} : vector<8x16xf32>, vector<16x16xf32>, vector<8x16xf32> -> vector<8x16xf32>
    %cst_15 = arith.constant dense<0.000000e+00> : vector<8x128xf32>
    %16 = tpu.matmul %15, %1, %cst_15 {dimension_numbers = #tpu.dot_dimension_numbers<[1], [0], [0], [1], [0, 0, 1, 1], [], []>, precision = #tpu.contract_precision<fp32>} : vector<8x16xf32>, vector<16x128xf32>, vector<8x128xf32> -> vector<8x128xf32>
    %cst_16 = arith.constant 0.00826446246 : f32
    %17 = vector.broadcast %cst_16 : f32 to vector<8x128xf32>
    %18 = arith.mulf %16, %17 : vector<8x128xf32>
    %19 = arith.mulf %5, %5 : vector<16x16xf32>
    %cst_17 = arith.constant dense<0.000000e+00> : vector<8x16xf32>
    %20 = tpu.matmul %0, %19, %cst_17 {dimension_numbers = #tpu.dot_dimension_numbers<[1], [0], [0], [1], [0, 0, 1, 1], [], []>, precision = #tpu.contract_precision<fp32>} : vector<8x16xf32>, vector<16x16xf32>, vector<8x16xf32> -> vector<8x16xf32>
    %cst_18 = arith.constant dense<0.000000e+00> : vector<8x128xf32>
    %21 = tpu.matmul %20, %1, %cst_18 {dimension_numbers = #tpu.dot_dimension_numbers<[1], [0], [0], [1], [0, 0, 1, 1], [], []>, precision = #tpu.contract_precision<fp32>} : vector<8x16xf32>, vector<16x128xf32>, vector<8x128xf32> -> vector<8x128xf32>
    %cst_19 = arith.constant 0.00826446246 : f32
    %22 = vector.broadcast %cst_19 : f32 to vector<8x128xf32>
    %23 = arith.mulf %21, %22 : vector<8x128xf32>
    %24 = arith.mulf %3, %5 : vector<16x16xf32>
    %cst_20 = arith.constant dense<0.000000e+00> : vector<8x16xf32>
    %25 = tpu.matmul %0, %24, %cst_20 {dimension_numbers = #tpu.dot_dimension_numbers<[1], [0], [0], [1], [0, 0, 1, 1], [], []>, precision = #tpu.contract_precision<fp32>} : vector<8x16xf32>, vector<16x16xf32>, vector<8x16xf32> -> vector<8x16xf32>
    %cst_21 = arith.constant dense<0.000000e+00> : vector<8x128xf32>
    %26 = tpu.matmul %25, %1, %cst_21 {dimension_numbers = #tpu.dot_dimension_numbers<[1], [0], [0], [1], [0, 0, 1, 1], [], []>, precision = #tpu.contract_precision<fp32>} : vector<8x16xf32>, vector<16x128xf32>, vector<8x128xf32> -> vector<8x128xf32>
    %cst_22 = arith.constant 0.00826446246 : f32
    %27 = vector.broadcast %cst_22 : f32 to vector<8x128xf32>
    %28 = arith.mulf %26, %27 : vector<8x128xf32>
    %29 = arith.mulf %9, %9 : vector<8x128xf32>
    %30 = arith.mulf %13, %13 : vector<8x128xf32>
    %31 = arith.mulf %9, %13 : vector<8x128xf32>
    %32 = arith.subf %18, %29 : vector<8x128xf32>
    %33 = arith.subf %23, %30 : vector<8x128xf32>
    %34 = arith.subf %28, %31 : vector<8x128xf32>
    %cst_23 = arith.constant 2.000000e+00 : f32
    %35 = vector.broadcast %cst_23 : f32 to vector<8x128xf32>
    %36 = arith.mulf %35, %31 : vector<8x128xf32>
    %cst_24 = arith.constant 9.99999974E-5 : f32
    %37 = vector.broadcast %cst_24 : f32 to vector<8x128xf32>
    %38 = arith.addf %36, %37 : vector<8x128xf32>
    %cst_25 = arith.constant 2.000000e+00 : f32
    %39 = vector.broadcast %cst_25 : f32 to vector<8x128xf32>
    %40 = arith.mulf %39, %34 : vector<8x128xf32>
    %cst_26 = arith.constant 8.99999984E-4 : f32
    %41 = vector.broadcast %cst_26 : f32 to vector<8x128xf32>
    %42 = arith.addf %40, %41 : vector<8x128xf32>
    %43 = arith.mulf %38, %42 : vector<8x128xf32>
    %44 = arith.addf %29, %30 : vector<8x128xf32>
    %cst_27 = arith.constant 9.99999974E-5 : f32
    %45 = vector.broadcast %cst_27 : f32 to vector<8x128xf32>
    %46 = arith.addf %44, %45 : vector<8x128xf32>
    %47 = arith.addf %32, %33 : vector<8x128xf32>
    %cst_28 = arith.constant 8.99999984E-4 : f32
    %48 = vector.broadcast %cst_28 : f32 to vector<8x128xf32>
    %49 = arith.addf %47, %48 : vector<8x128xf32>
    %50 = arith.mulf %46, %49 : vector<8x128xf32>
    %51 = tpu.reciprocal %50 : vector<8x128xf32> -> vector<8x128xf32>
    %52 = arith.mulf %43, %51 : vector<8x128xf32>
    %53 = tpu.iota {dimensions = array<i32: 0>} : vector<8x128xi32>
    %54 = tpu.iota {dimensions = array<i32: 1>} : vector<8x128xi32>
    %c1_i32 = arith.constant 1 : i32
    %55 = vector.broadcast %c1_i32 : i32 to vector<8x128xi32>
    %56 = arith.cmpi slt, %53, %55 : vector<8x128xi32>
    %c1_i32_29 = arith.constant 1 : i32
    %57 = vector.broadcast %c1_i32_29 : i32 to vector<8x128xi32>
    %58 = arith.cmpi slt, %54, %57 : vector<8x128xi32>
    %59 = arith.andi %56, %58 : vector<8x128xi1>
    %cst_30 = arith.constant 0.000000e+00 : f32
    %60 = vector.broadcast %cst_30 : f32 to vector<8x128xf32>
    %61 = arith.select %59, %52, %60 : vector<8x128xi1>, vector<8x128xf32>
    %62 = vector.shape_cast %61 : vector<8x128xf32> to vector<1x8x128xf32>
    %cst_31 = arith.constant dense<0.000000e+00> : vector<1xf32>
    %63 = vector.multi_reduction <add>, %62, %cst_31 [1, 2] : vector<1x8x128xf32> to vector<1xf32>
    %64 = vector.shape_cast %63 : vector<1xf32> to vector<1x1x1xf32>
    %65 = vector.extract %64[0, 0, 0] : f32 from vector<1x1x1xf32>
    %66 = vector.broadcast %65 : f32 to vector<1x1x128xf32>
    %c0_32 = arith.constant 0 : index
    %c0_33 = arith.constant 0 : index
    %c0_34 = arith.constant 0 : index
    %67 = vector.load %arg5[%c0_32, %c0_33, %c0_34] : memref<1x1x128xf32, #tpu.memory_space<vmem>>, vector<1x1x128xf32>
    tpu.vector_store %arg5[%c0_32, %c0_33, %c0_34], %66 {strides = array<i32>} : memref<1x1x128xf32, #tpu.memory_space<vmem>>, vector<1x1x128xf32>,
    return
  }
  func.func @transform_0(%arg0: i32) -> (i32, i32) {
    %c0_i32 = arith.constant 0 : i32
    %c0_i32_0 = arith.constant 0 : i32
    %c0_i32_1 = arith.constant 0 : i32
    return %c0_i32, %c0_i32_0 : i32, i32
  }
  func.func @transform_1(%arg0: i32) -> (i32, i32) {
    %c0_i32 = arith.constant 0 : i32
    %c0_i32_0 = arith.constant 0 : i32
    %c0_i32_1 = arith.constant 0 : i32
    return %c0_i32, %c0_i32_0 : i32, i32
  }
  func.func @transform_2(%arg0: i32) -> (i32, i32, i32) {
    %c0_i32 = arith.constant 0 : i32
    %c0_i32_0 = arith.constant 0 : i32
    %c0_i32_1 = arith.constant 0 : i32
    return %arg0, %c0_i32, %c0_i32_0 : i32, i32, i32
  }
  func.func @transform_3(%arg0: i32) -> (i32, i32, i32) {
    %c0_i32 = arith.constant 0 : i32
    %c0_i32_0 = arith.constant 0 : i32
    %c0_i32_1 = arith.constant 0 : i32
    return %arg0, %c0_i32, %c0_i32_0 : i32, i32, i32
  }
  func.func @transform_4(%arg0: i32) -> (i32, i32, i32) {
    %c0_i32 = arith.constant 0 : i32
    %c0_i32_0 = arith.constant 0 : i32
    %c0_i32_1 = arith.constant 0 : i32
    return %arg0, %c0_i32, %c0_i32_0 : i32, i32, i32
  }
}

</mosaic_0001>

<bundles_post_ra>
// kernel: ssim_loss.1
= control target key start
LH: loop header
LB: loop body
LE: loop exit
PB: predicated region body
PF: predicated region fallthrough
CT: control target
= control target key end

     0   :  { %9 = vsyncpa [#allocation3], 0  ;;  %s6633_s0 = inlined_call_operand.vmem [shape: f32[8,16], index: 0, kind: input, shape index: {}]   ;;  %s6634_s1 = inlined_call_operand.vmem [shape: f32[16,128], index: 1, kind: input, shape index: {}]   ;;  %s6635_s2 = inlined_call_operand.hbm [shape: f32[8,16,16], index: 2, kind: input, shape index: {}]   ;;  %s6636_s3 = inlined_call_operand.hbm [shape: f32[8,16,16], index: 3, kind: input, shape index: {}]   ;;  %s6637_s4 = inlined_call_operand.vmem [shape: f32[8,1,128], index: 4, kind: output, shape index: {}]  }
   0x1   :  { %11 = vsyncpa [#allocation3 + $0x1], 0 }
   0x2   :  { %12 = vsyncpa [#allocation5], 0 }
   0x3   :  { %14 = vsyncpa [#allocation5 + $0x1], 0  ;;  %s6081_s15 = smov 0   ;;  %s6083_s16 = smov 0  }
   0x4   :  { %s6085_s17 = smov 0   ;;  %s6087_s18 = smov 0  }
   0x5 LB: > { %s6100_s19 = sadd.s32 4294967295, %s6047_s18   ;;  %s6103_s20 = sadd.s32 1, %s6047_s18   ;;  %s6047_s18 = sphi %s6087_s18, %s6647_s18   ;;  %s6043_s17 = sphi %s6085_s17, %s6646_s17   ;;  %s6039_s16 = sphi %s6083_s16, %s6645_s16   ;;  %s6035_s15 = sphi %s6081_s15, %s6644_s15  }
   0x6   : > { %s66_s21 = ssub.s32 %s6047_s18, %s6103_s20  ;;  %s69_s22 = sadd.s32 1, %s6043_s17 }
   0x7   : > { %p67_p0 = scmp.eq.s32.totalorder %s66_s21, 0  ;;  %p76_p1 = scmp.ne.s32.totalorder %s6043_s17, %s6039_s16 }
   0x8   : > { %p77_p2 = scmp.eq.s32.totalorder %s6047_s18, 0  ;;  %p82_p3 = scmp.ne.s32.totalorder %s6039_s16, %s6035_s15 }
   0x9   : > { %s6113_s23 = scalar_select %p67_p0, %s6043_s17, %s69_s22  }
   0xa   : > { %p78_p4 = por %p77_p2, %p76_p1  ;;  %p83_p5 = scmp.eq.s32.totalorder %s6100_s19, 0 }
   0xb   : > { %p5909_p6 = scmp.lt.s32.totalorder %s6047_s18, 8  ;;  %s6122_s25 = sand.u32 1, %s6043_s17  }
   0xc   : > { %p6117_p7 = por %p83_p5, %p82_p3  ;;  %s5003_s26 = sshll.u32 %s6122_s25, 4 }
   0xd   : > { %s5014_s27 = sshll.u32 %s6047_s18, 8  ;;  %s168_s5 = scalar_lea.vmem [#allocation2], %s5003_s26 }
   0xe   : > { %s6639_s24 = scalar_select %p6117_p7, 1, 0 }
   0xf   : > { %s6131_s30 = scalar_lea.hbm %s6635_s2, %s5014_s27  ;;  %s175_s6 = sshll.u32 %s168_s5, 4  ;;  %s6135_s6 = int_to_ptr.vmem [resolvable:$true] %s175_s6 }
  0x10   : > { %p6137_p8 = pnand %p5909_p6, %p78_p4  ;;  %s165_s8 = scalar_lea.sflag [#allocation3], %s6122_s25 }
  0x11   : > { %s5949_s9 = scalar_lea.hbm %s6131_s30, 256  ;;  %s5954_s12 = scalar_lea.hbm %s6635_s2, 2048 }
  0x12   : > { %p5950_p10 = scmp.ne.s32.totalorder %s6131_s30, %s5949_s9  ;;  %p5951_p11 = pneg %p6137_p8 }
  0x13   : > { %p5955_p0 = scmp.lt.u32.totalorder %s6131_s30, %s6635_s2  ;;  %p5956_p1 = scmp.lt.u32.totalorder %s5954_s12, %s5949_s9 }
  0x14   : > { %p5952_p12 = pnand %p5951_p11, %p5950_p10  ;;  %p5958_p3 = scmp.lt.u32.totalorder %s5949_s9, %s6131_s30 }
  0x15   : > { %p5957_p2 = por %p5956_p1, %p5955_p0 }
  0x16   : > { %p5953_p13 = pneg %p5952_p12 }
  0x17   : > { %p5959_p4 = por %p5958_p3, %p5957_p2 }
  0x19   : > { %p5960_p5 = pnand %p5959_p4, %p5953_p13 }
  0x1b   : > { %5963 = shalt.err (!%p5960_p5)
}
  0x1c   : > { %s5964_s15 = scalar_lea.vmem %s6135_s6, 256  ;;  %s6049_s21 = smov [#allocation2]  }
  0x1d   : > { %p5965_p6 = scmp.ne.s32.totalorder %s6135_s6, %s5964_s15  ;;  %s5969_s22 = sshll.u32 %s6049_s21, 4  ;;  %s5970_s22 = int_to_ptr.vmem [resolvable:$false] %s5969_s22 }
  0x1e   : > { %s5971_s28 = scalar_lea.vmem %s5970_s22, 512  ;;  %p5972_p9 = scmp.lt.s32.totalorder %s6135_s6, %s5970_s22 }
  0x1f   : > { %p5967_p10 = pnand %p5965_p6, %p5951_p11  ;;  %p5973_p0 = scmp.lt.s32.totalorder %s5971_s28, %s5964_s15 }
  0x21   : > { %p5968_p12 = pneg %p5967_p10  ;;  %p5974_p1 = por %p5973_p0, %p5972_p9 }
  0x23   : > { %p5975_p2 = pnand %p5974_p1, %p5968_p12 }
  0x25   : > { %5978 = shalt.err (!%p5975_p2)
}
  0x26   : > { %s6050_s29 = smov 128   ;;  %s6051_s5 = smov 8  }
  0x27   : > { %5905 = dma.hbm_to_vmem [thread:$0]  (!%p6137_p8), %s6131_s30, 256, %s6135_s6, %s165_s8, %s6050_s29, %s6050_s29, %s6051_s5  }
  0x28   : > { %p204_p9 = scmp.lt.s32.totalorder %s6047_s18, 9  ;;  %s6179_s11 = scalar_lea.hbm %s6636_s3, %s5014_s27 }
  0x29   : > { %p6641_p13 = scmp.ge.s32.totalorder %s6047_s18, 1  ;;  %s189_s13 = scalar_lea.vmem [#allocation4], %s5003_s26 }
  0x2a   : > { %s196_s14 = sshll.u32 %s189_s13, 4  ;;  %s186_s30 = scalar_lea.sflag [#allocation5], %s6122_s25  ;;  %s6189_s14 = int_to_ptr.vmem [resolvable:$true] %s196_s14 }
  0x2b   : > { %p6183_p3 = pnand %p6641_p13, %p204_p9  ;;  %s5979_s6 = scalar_lea.hbm %s6179_s11, 256 }
  0x2c   : > { %p5980_p4 = scmp.ne.s32.totalorder %s6179_s11, %s5979_s6  ;;  %s5984_s8 = scalar_lea.hbm %s6636_s3, 2048 }
  0x2d   : > { %p5985_p10 = scmp.lt.u32.totalorder %s6179_s11, %s6636_s3  ;;  %p5986_p12 = scmp.lt.u32.totalorder %s5984_s8, %s5979_s6 }
  0x2e   : > { %p5982_p5 = pnand %p5980_p4, %p5951_p11  ;;  %p5988_p1 = scmp.lt.u32.totalorder %s5979_s6, %s6179_s11 }
  0x2f   : > { %p5987_p0 = por %p5986_p12, %p5985_p10 }
  0x30   : > { %p5983_p6 = pneg %p5982_p5 }
  0x31   : > { %p5989_p2 = por %p5988_p1, %p5987_p0 }
  0x33   : > { %p5990_p9 = pnand %p5989_p2, %p5983_p6 }
  0x35   : > { %5993 = shalt.err (!%p5990_p9)
}
  0x36   : > { %s5994_s26 = scalar_lea.vmem %s6189_s14, 256  ;;  %s6052_s22 = smov [#allocation4]  }
  0x37   : > { %p5995_p13 = scmp.ne.s32.totalorder %s6189_s14, %s5994_s26  ;;  %s5999_s28 = sshll.u32 %s6052_s22, 4  ;;  %s6000_s28 = int_to_ptr.vmem [resolvable:$false] %s5999_s28 }
  0x38   : > { %s6001_s9 = scalar_lea.vmem %s6000_s28, 512  ;;  %p6002_p7 = scmp.lt.s32.totalorder %s6189_s14, %s6000_s28 }
  0x39   : > { %p5997_p4 = pnand %p5995_p13, %p5951_p11  ;;  %p6003_p10 = scmp.lt.s32.totalorder %s6001_s9, %s5994_s26 }
  0x3b   : > { %p5998_p5 = pneg %p5997_p4  ;;  %p6004_p12 = por %p6003_p10, %p6002_p7 }
  0x3d   : > { %p6005_p0 = pnand %p6004_p12, %p5998_p5 }
  0x3f   : > { %6008 = shalt.err (!%p6005_p0)
}
  0x40   : > { %5908 = dma.hbm_to_vmem [thread:$0]  (!%p6137_p8), %s6179_s11, 256, %s6189_s14, %s186_s30, %s6050_s29, %s6050_s29, %s6051_s5  }
  0x41   : > { %208 = sbr.rel (%p6183_p3) target bundleno = 998 (0x3e6), region = 36  ;;  %s210_s10 = sand.u32 (!%p6183_p3), 1, %s6039_s16  }
  0x42   : > { %s5010_s13 = sshll.u32 (!%p6183_p3), %s210_s10, 4  ;;  %s211_s6 = scalar_lea.sflag (!%p6183_p3), [#allocation3], %s210_s10 }
  0x43   : > { %s214_s18 = scalar_lea.vmem (!%p6183_p3), [#allocation2], %s5010_s13  ;;  %p6643_p7 = scmp.ne.s32.totalorder (!%p6183_p3), %s6639_s24, 0 }
  0x48   : > { %6026 = dma.done.wait (%p6643_p7), %s211_s6, 256  }
  0x49   : > { %6028 = vsyncadd (%p6643_p7), %s211_s6, 4294967040  ;;  %s220_s7 = scalar_lea.sflag [#allocation5], %s210_s10  ;;  %s6227_s25 = scalar_lea.vmem [#allocation4], %s5010_s13 }
  0x4a   : > { %6030 = dma.done.wait (%p6643_p7), %s220_s7, 256  }
  0x4b   : > { %6032 = vsyncadd (%p6643_p7), %s220_s7, 4294967040  ;;  %v6053_v0 = vmov 0.0|0.0   ;;  %vm6054_vm0 = vmmov 0   ;;  %v6055_v1 = vmov 0.0   ;;  %vm261_vm1 = vcmask 130048   ;;  %v6239_v2 = vld [vmem:[%s214_s18] sm:$0xff] }
  0x4c   : > { %5616 = vmatprep.subr.bf16.mxu0 %v6053_v0  ;;  %5200 = vmatprep.mubr.msk.f32.mxu0 %vm6054_vm0, %v6055_v1  ;;  %v6241_v3 = vld [vmem:[%s214_s18 + $0x8] sm:$0xff]  ;;  %v266_v4 = vand.u32 4294901760, %v6239_v2  ;;  %v254_v5 = vld [vmem:[%s6633_s0] sm:$0xff]  ;;  %v2109_v6 = vmul.f32 %v6239_v2, %v6239_v2  ;;  %p251_p8 = scmp.lt.s32.totalorder %s6100_s19, 7 }
  0x4d   : > { %5634 = vmatprep.subr.bf16.mxu1 %v6053_v0  ;;  %5242 = vmatprep.mubr.msk.f32.mxu1 %vm6054_vm0, %v6055_v1  ;;  %v269_v7 = vand.u32 4294901760, %v6241_v3  ;;  %v263_v8 = vsel %vm261_vm1, %v254_v5, 0  ;;  %v2110_v9 = vmul.f32 %v6241_v3, %v6241_v3  ;;  %v6274_v27 = vld [vmem:[%s6227_s25] sm:$0xff]  ;;  %v6277_v28 = vld [vmem:[%s6227_s25 + $0x8] sm:$0xff] }
  0x4e   : > { %v344_v10 = vsub.f32 %v6239_v2, %v266_v4  ;;  %v6254_v11 = vand.u32 4294901760, %v263_v8  ;;  %v2112_v12 = vand.u32 4294901760, %v2109_v6  ;;  %v3033_v32 = vmul.f32 %v6274_v27, %v6274_v27  ;;  %s6649_s19 = smov (!%p251_p8, %s6100_s19), 7 }
  0x4f   : > { %v6256_v13 = vpack.c.bf16 %v269_v7, %v266_v4  ;;  %v351_v14 = vsub.f32 %v6241_v3, %v269_v7  ;;  %v2115_v15 = vand.u32 4294901760, %v2110_v9  ;;  %v3034_v33 = vmul.f32 %v6277_v28, %v6277_v28  ;;  %s253_s8 = scalar_lea.vmem %s6637_s4, %s6649_s19 }
  0x50   : > { %v6260_v16 = vsub.f32 %v263_v8, %v6254_v11  ;;  %v345_v17 = vand.u32 4294901760, %v344_v10  ;;  %v6269_v23 = vsub.f32 %v2109_v6, %v2112_v12  ;;  %v3036_v38 = vand.u32 4294901760, %v3033_v32 }
  0x51   : > { %5618 = vmatpush3.bf16.msra.mxu0 %v6256_v13  ;;  %v352_v18 = vand.u32 4294901760, %v351_v14  ;;  %v6263_v19 = vpack.c.bf16 %v2115_v15, %v2112_v12  ;;  %v6279_v29 = vsub.f32 %v2110_v9, %v2115_v15  ;;  %v3039_v39 = vand.u32 4294901760, %v3034_v33 }
  0x52   : > { %v6266_v20 = vand.u32 4294901760, %v6260_v16  ;;  %5619 = vmatprep.subr.bf16.mxu0 %v6053_v0  ;;  %v346_v21 = vsub.f32 %v344_v10, %v345_v17  ;;  %v2191_v30 = vand.u32 4294901760, %v6269_v23  ;;  %v6301_v44 = vsub.f32 %v3033_v32, %v3036_v38 }
  0x53   : > { %v353_v22 = vsub.f32 %v351_v14, %v352_v18  ;;  %v2198_v36 = vand.u32 4294901760, %v6279_v29  ;;  %v5695_v37 = vpack.c.bf16 %v6279_v29, %v6269_v23  ;;  %v6299_v43 = vpack.c.bf16 %v3039_v39, %v3036_v38 }
  0x54   : > { %v335_v24 = vsub.f32 %v6260_v16, %v6266_v20  ;;  %v347_v25 = vand.u32 4294901760, %v346_v21  ;;  %v2192_v35 = vsub.f32 %v6269_v23, %v2191_v30  ;;  %v6303_v45 = vsub.f32 %v3034_v33, %v3039_v39  ;;  %v255_v23 = vld [vmem:[%s6634_s1] sm:$0xff] }
  0x55   : > { %v354_v26 = vand.u32 4294901760, %v353_v22  ;;  %v2199_v41 = vsub.f32 %v6279_v29, %v2198_v36  ;;  %v6296_v42 = vpack.c.bf16 %v2198_v36, %v2191_v30  ;;  %v3115_v47 = vand.u32 4294901760, %v6301_v44  ;;  %v256_v29 = vld [vmem:[%s6634_s1 + $0x8] sm:$0xff] }
  0x56   : > { %v6282_v31 = vand.u32 4294901760, %v335_v24  ;;  %v2193_v40 = vand.u32 4294901760, %v2192_v35  ;;  %v3122_v48 = vand.u32 4294901760, %v6303_v45  ;;  %v5623_v49 = vpack.c.bf16 %v351_v14, %v344_v10 }
  0x57   : > { %v5620_v34 = vpack.c.bf16 %v354_v26, %v347_v25  ;;  %v2200_v46 = vand.u32 4294901760, %v2199_v41  ;;  %v3116_v51 = vsub.f32 %v6301_v44, %v3115_v47  ;;  %v5731_v56 = vpack.c.bf16 %v6303_v45, %v6301_v44 }
  0x58   : > { %5201 = vmatmul.mubr.f32.vlgmr.msra.gmra.mrb[0].mxu0 %v6282_v31  ;;  %v3123_v52 = vsub.f32 %v6303_v45, %v3122_v48  ;;  %v5629_v57 = vpack.c.bf16 %v352_v18, %v345_v17  ;;  %v1188_v58 = vand.u32 4294901760, %v6274_v27  ;;  %v1191_v59 = vand.u32 4294901760, %v6277_v28 }
  0x59   : > { %5621 = vmatpush3.bf16.msra.mxu0 %v5620_v34  ;;  %5207 = vmatprep.mubr.msk.f32.mxu0 %vm6054_vm0, %v6055_v1  ;;  %v6307_v50 = vpack.c.bf16 %v2200_v46, %v2193_v40  ;;  %v3117_v53 = vand.u32 4294901760, %v3116_v51  ;;  %v6332_v62 = vpack.c.bf16 %v3122_v48, %v3115_v47  ;;  %v3957_v10 = vmul.f32 %v6274_v27, %v6239_v2 }
  0x5a   : > { %5622 = vmatprep.subr.bf16.mxu0 %v6053_v0  ;;  %v3124_v54 = vand.u32 4294901760, %v3123_v52  ;;  %v1266_v60 = vsub.f32 %v6274_v27, %v1188_v58  ;;  %v1273_v61 = vsub.f32 %v6277_v28, %v1191_v59  ;;  %v5653_v7 = vpack.c.bf16 %v1191_v59, %v1188_v58 }
  0x5b   : > { %v3958_v12 = vmul.f32 %v6277_v28, %v6241_v3  ;;  %v3960_v14 = vand.u32 4294901760, %v3957_v10  ;;  %v728_v34 = vand.u32 4294901760, %v255_v23  ;;  %v731_v35 = vand.u32 4294901760, %v256_v29 }
  0x5c   : > { %v6315_v55 = vpack.c.bf16 %v3124_v54, %v3117_v53  ;;  %v1267_v63 = vand.u32 4294901760, %v1266_v60  ;;  %v1274_v4 = vand.u32 4294901760, %v1273_v61  ;;  %v5659_v25 = vpack.c.bf16 %v1273_v61, %v1266_v60 }
  0x5d   : > { %v3963_v15 = vand.u32 4294901760, %v3958_v12  ;;  %v6349_v18 = vsub.f32 %v3957_v10, %v3960_v14  ;;  %v806_v36 = vsub.f32 %v255_v23, %v728_v34 }
  0x5e   : > { %v1268_v5 = vsub.f32 %v1266_v60, %v1267_v63  ;;  %v1275_v6 = vsub.f32 %v1273_v61, %v1274_v4  ;;  %v5665_v32 = vpack.c.bf16 %v1274_v4, %v1267_v63 }
  0x5f   : > { %v6347_v17 = vpack.c.bf16 %v3963_v15, %v3960_v14  ;;  %v6351_v21 = vsub.f32 %v3958_v12, %v3963_v15  ;;  %v4039_v2 = vand.u32 4294901760, %v6349_v18  ;;  %v807_v38 = vand.u32 4294901760, %v806_v36 }
  0x60   : > { %5208 = vmatmul.mubr.f32.vlgmr.msra.gmra.mrb[0].mxu0 %v6254_v11  ;;  %v1269_v8 = vand.u32 4294901760, %v1268_v5  ;;  %v1276_v9 = vand.u32 4294901760, %v1275_v6 }
  0x61   : > { %5624 = vmatpush3.bf16.msra.mxu0 %v5623_v49  ;;  %5214 = vmatprep.mubr.msk.f32.mxu0 %vm6054_vm0, %v6055_v1  ;;  %v4046_v3 = vand.u32 4294901760, %v6351_v21  ;;  %v4040_v22 = vsub.f32 %v6349_v18, %v4039_v2  ;;  %v5767_v30 = vpack.c.bf16 %v6351_v21, %v6349_v18  ;;  %v808_v40 = vsub.f32 %v806_v36, %v807_v38 }
  0x62   : > { %5625 = vmatprep.subr.bf16.mxu0 %v6053_v0 }
  0x63   : > { %v4047_v24 = vsub.f32 %v6351_v21, %v4046_v3  ;;  %v4041_v26 = vand.u32 4294901760, %v4040_v22  ;;  %v6377_v33 = vpack.c.bf16 %v4046_v3, %v4039_v2 }
  0x65   : > { %v4048_v27 = vand.u32 4294901760, %v4047_v24 }
  0x67   : > { %v6361_v28 = vpack.c.bf16 %v4048_v27, %v4041_v26 }
  0x68   : > { %5215 = vmatmul.mubr.f32.vlgmr.msra.gmra.mrb[0].mxu0 %v6260_v16 }
  0x69   : > { %5627 = vmatpush3.bf16.msra.mxu0 %v6256_v13  ;;  %5221 = vmatprep.mubr.msk.f32.mxu0 %vm6054_vm0, %v6055_v1 }
  0x6a   : > { %5628 = vmatprep.subr.bf16.mxu0 %v6053_v0 }
  0x70   : > { %5222 = vmatmul.mubr.f32.vlgmr.msra.gmra.mrb[0].mxu0 %v6266_v20 }
  0x71   : > { %5630 = vmatpush3.bf16.msra.mxu0 %v5629_v57  ;;  %5228 = vmatprep.mubr.msk.f32.mxu0 %vm6054_vm0, %v6055_v1 }
  0x72   : > { %5631 = vmatprep.subr.bf16.mxu0 %v6053_v0 }
  0x78   : > { %5229 = vmatmul.mubr.f32.vlgmr.msra.gmra.mrb[0].mxu0 %v6254_v11 }
  0x79   : > { %5633 = vmatpush3.bf16.msra.mxu0 %v6256_v13  ;;  %5235 = vmatprep.mubr.msk.f32.mxu0 %vm6054_vm0, %v6055_v1  ;;  %v5656_v13 = vpack.c.bf16 %v1276_v9, %v1269_v8 }
  0x7a   : > { %5652 = vmatprep.subr.bf16.mxu0 %v6053_v0 }
  0x80   : > { %5236 = vmatmul.mubr.f32.vlgmr.msra.gmra.mrb[0].mxu0 %v6254_v11 }
  0x81   : > { %5654 = vmatpush3.bf16.msra.mxu0 %v5653_v7  ;;  %5284 = vmatprep.mubr.msk.f32.mxu0 %vm6054_vm0, %v6055_v1 }
  0x82   : > { %5655 = vmatprep.subr.bf16.mxu0 %v6053_v0 }
  0x84   : > { %5285 = vmatmul.mubr.f32.vlgmr.msra.gmra.mrb[2].mxu0 %v6282_v31 }
  0x85   : > { %5657 = vmatpush3.bf16.msra.mxu0 %v5656_v13  ;;  %5291 = vmatprep.mubr.msk.f32.mxu0 %vm6054_vm0, %v6055_v1 }
  0x86   : > { %5658 = vmatprep.subr.bf16.mxu0 %v6053_v0 }
  0x8c   : > { %5292 = vmatmul.mubr.f32.vlgmr.msra.gmra.mrb[2].mxu0 %v6254_v11 }
  0x8d   : > { %5660 = vmatpush3.bf16.msra.mxu0 %v5659_v25  ;;  %5298 = vmatprep.mubr.msk.f32.mxu0 %vm6054_vm0, %v6055_v1 }
  0x8e   : > { %5661 = vmatprep.subr.bf16.mxu0 %v6053_v0 }
  0x94   : > { %5299 = vmatmul.mubr.f32.vlgmr.msra.gmra.mrb[2].mxu0 %v6260_v16 }
  0x95   : > { %5663 = vmatpush3.bf16.msra.mxu0 %v5653_v7  ;;  %5305 = vmatprep.mubr.msk.f32.mxu0 %vm6054_vm0, %v6055_v1 }
  0x96   : > { %5664 = vmatprep.subr.bf16.mxu0 %v6053_v0 }
  0x9c   : > { %5306 = vmatmul.mubr.f32.vlgmr.msra.gmra.mrb[2].mxu0 %v6266_v20 }
  0x9d   : > { %5666 = vmatpush3.bf16.msra.mxu0 %v5665_v32  ;;  %5312 = vmatprep.mubr.msk.f32.mxu0 %vm6054_vm0, %v6055_v1 }
  0x9e   : > { %5667 = vmatprep.subr.bf16.mxu0 %v6053_v0 }
  0xa4   : > { %5313 = vmatmul.mubr.f32.vlgmr.msra.gmra.mrb[2].mxu0 %v6254_v11 }
  0xa5   : > { %5669 = vmatpush3.bf16.msra.mxu0 %v5653_v7  ;;  %5319 = vmatprep.mubr.msk.f32.mxu0 %vm6054_vm0, %v6055_v1 }
  0xa6   : > { %5688 = vmatprep.subr.bf16.mxu0 %v6053_v0 }
  0xac   : > { %5320 = vmatmul.mubr.f32.vlgmr.msra.gmra.mrb[2].mxu0 %v6254_v11 }
  0xad   : > { %5690 = vmatpush3.bf16.msra.mxu0 %v6263_v19  ;;  %5368 = vmatprep.mubr.msk.f32.mxu0 %vm6054_vm0, %v6055_v1 }
  0xae   : > { %5691 = vmatprep.subr.bf16.mxu0 %v6053_v0 }
  0xb0   : > { %5369 = vmatmul.mubr.f32.vlgmr.msra.gmra.mrb[4].mxu0 %v6282_v31 }
  0xb1   : > { %5693 = vmatpush3.bf16.msra.mxu0 %v6307_v50  ;;  %5375 = vmatprep.mubr.msk.f32.mxu0 %vm6054_vm0, %v6055_v1 }
  0xb2   : > { %5694 = vmatprep.subr.bf16.mxu0 %v6053_v0 }
  0xb8   : > { %5376 = vmatmul.mubr.f32.vlgmr.msra.gmra.mrb[4].mxu0 %v6254_v11 }
  0xb9   : > { %5696 = vmatpush3.bf16.msra.mxu0 %v5695_v37  ;;  %5382 = vmatprep.mubr.msk.f32.mxu0 %vm6054_vm0, %v6055_v1  ;;  %v813_v37 = vsub.f32 %v256_v29, %v731_v35 }
  0xba   : > { %5697 = vmatprep.subr.bf16.mxu0 %v6053_v0 }
  0xbb   : > { %v814_v39 = vand.u32 4294901760, %v813_v37  ;;  %v6444_v48 = vpack.c.bf16 %v813_v37, %v806_v36 }
  0xbd   : > { %v815_v41 = vsub.f32 %v813_v37, %v814_v39  ;;  %v6456_v44 = vpack.c.bf16 %v814_v39, %v807_v38 }
  0xbf   : > { %v816_v46 = vand.u32 4294901760, %v815_v41 }
  0xc0   : > { %5383 = vmatmul.mubr.f32.vlgmr.msra.gmra.mrb[4].mxu0 %v6260_v16 }
  0xc1   : > { %5699 = vmatpush3.bf16.msra.mxu0 %v6263_v19  ;;  %5389 = vmatprep.mubr.msk.f32.mxu0 %vm6054_vm0, %v6055_v1 }
  0xc2   : > { %5700 = vmatprep.subr.bf16.mxu0 %v6053_v0 }
  0xc8   : > { %5390 = vmatmul.mubr.f32.vlgmr.msra.gmra.mrb[4].mxu0 %v6266_v20 }
  0xc9   : > { %5702 = vmatpush3.bf16.msra.mxu0 %v6296_v42  ;;  %5396 = vmatprep.mubr.msk.f32.mxu0 %vm6054_vm0, %v6055_v1  ;;  %v809_v42 = vand.u32 4294901760, %v808_v40 }
  0xca   : > { %5703 = vmatprep.subr.bf16.mxu0 %v6053_v0 }
  0xcb   : > { %v6435_v47 = vpack.c.bf16 %v816_v46, %v809_v42 }
  0xd0   : > { %5397 = vmatmul.mubr.f32.vlgmr.msra.gmra.mrb[4].mxu0 %v6254_v11 }
  0xd1   : > { %5705 = vmatpush3.bf16.msra.mxu0 %v6263_v19  ;;  %5403 = vmatprep.mubr.msk.f32.mxu0 %vm6054_vm0, %v6055_v1  ;;  %v6425_v19 = vpack.c.bf16 %v731_v35, %v728_v34 }
  0xd2   : > { %5724 = vmatprep.subr.bf16.mxu0 %v6053_v0 }
  0xd3   : > { %5636 = vmatpush3.bf16.msra.mxu1 %v6425_v19 }
  0xd4   : > { %5637 = vmatprep.subr.bf16.mxu1 %v6053_v0 }
  0xd8   : > { %5404 = vmatmul.mubr.f32.vlgmr.msra.gmra.mrb[4].mxu0 %v6254_v11 }
  0xd9   : > { %5726 = vmatpush3.bf16.msra.mxu0 %v6299_v43  ;;  %5452 = vmatprep.mubr.msk.f32.mxu0 %vm6054_vm0, %v6055_v1 }
  0xda   : > { %5727 = vmatprep.subr.bf16.mxu0 %v6053_v0 }
  0xdc   : > { %5453 = vmatmul.mubr.f32.vlgmr.msra.gmra.mrb[6].mxu0 %v6282_v31 }
  0xdd   : > { %5729 = vmatpush3.bf16.msra.mxu0 %v6315_v55  ;;  %5459 = vmatprep.mubr.msk.f32.mxu0 %vm6054_vm0, %v6055_v1 }
  0xde   : > { %5730 = vmatprep.subr.bf16.mxu0 %v6053_v0 }
  0xe4   : > { %5460 = vmatmul.mubr.f32.vlgmr.msra.gmra.mrb[6].mxu0 %v6254_v11 }
  0xe5   : > { %5732 = vmatpush3.bf16.msra.mxu0 %v5731_v56  ;;  %5466 = vmatprep.mubr.msk.f32.mxu0 %vm6054_vm0, %v6055_v1 }
  0xe6   : > { %5733 = vmatprep.subr.bf16.mxu0 %v6053_v0 }
  0xec   : > { %5467 = vmatmul.mubr.f32.vlgmr.msra.gmra.mrb[6].mxu0 %v6260_v16 }
  0xed   : > { %5735 = vmatpush3.bf16.msra.mxu0 %v6299_v43  ;;  %5473 = vmatprep.mubr.msk.f32.mxu0 %vm6054_vm0, %v6055_v1 }
  0xee   : > { %5736 = vmatprep.subr.bf16.mxu0 %v6053_v0 }
  0xf4   : > { %5474 = vmatmul.mubr.f32.vlgmr.msra.gmra.mrb[6].mxu0 %v6266_v20 }
  0xf5   : > { %5738 = vmatpush3.bf16.msra.mxu0 %v6332_v62  ;;  %5480 = vmatprep.mubr.msk.f32.mxu0 %vm6054_vm0, %v6055_v1 }
  0xf6   : > { %5739 = vmatprep.subr.bf16.mxu0 %v6053_v0 }
  0xfc   : > { %5481 = vmatmul.mubr.f32.vlgmr.msra.gmra.mrb[6].mxu0 %v6254_v11 }
  0xfd   : > { %5741 = vmatpush3.bf16.msra.mxu0 %v6299_v43  ;;  %5487 = vmatprep.mubr.msk.f32.mxu0 %vm6054_vm0, %v6055_v1 }
  0xfe   : > { %5760 = vmatprep.subr.bf16.mxu0 %v6053_v0 }
 0x104   : > { %5488 = vmatmul.mubr.f32.vlgmr.msra.gmra.mrb[6].mxu0 %v6254_v11 }
 0x105   : > { %5762 = vmatpush3.bf16.msra.mxu0 %v6347_v17  ;;  %5536 = vmatprep.mubr.msk.f32.mxu0 %vm6054_vm0, %v6055_v1 }
 0x106   : > { %5763 = vmatprep.subr.bf16.mxu0 %v6053_v0 }
 0x108   : > { %5537 = vmatmul.mubr.f32.vlgmr.msra.gmra.mrb[8].mxu0 %v6282_v31 }
 0x109   : > { %5765 = vmatpush3.bf16.msra.mxu0 %v6361_v28  ;;  %5543 = vmatprep.mubr.msk.f32.mxu0 %vm6054_vm0, %v6055_v1 }
 0x10a   : > { %5766 = vmatprep.subr.bf16.mxu0 %v6053_v0 }
 0x110   : > { %5544 = vmatmul.mubr.f32.vlgmr.msra.gmra.mrb[8].mxu0 %v6254_v11 }
 0x111   : > { %5768 = vmatpush3.bf16.msra.mxu0 %v5767_v30  ;;  %5550 = vmatprep.mubr.msk.f32.mxu0 %vm6054_vm0, %v6055_v1 }
 0x112   : > { %5769 = vmatprep.subr.bf16.mxu0 %v6053_v0 }
 0x118   : > { %5551 = vmatmul.mubr.f32.vlgmr.msra.gmra.mrb[8].mxu0 %v6260_v16 }
 0x119   : > { %5771 = vmatpush3.bf16.msra.mxu0 %v6347_v17  ;;  %5557 = vmatprep.mubr.msk.f32.mxu0 %vm6054_vm0, %v6055_v1 }
 0x11a   : > { %5772 = vmatprep.subr.bf16.mxu0 %v6053_v0 }
 0x120   : > { %5558 = vmatmul.mubr.f32.vlgmr.msra.gmra.mrb[8].mxu0 %v6266_v20 }
 0x121   : > { %5774 = vmatpush3.bf16.msra.mxu0 %v6377_v33  ;;  %5564 = vmatprep.mubr.msk.f32.mxu0 %vm6054_vm0, %v6055_v1 }
 0x122   : > { %5775 = vmatprep.subr.bf16.mxu0 %v6053_v0 }
 0x128   : > { %5565 = vmatmul.mubr.f32.vlgmr.msra.gmra.mrb[8].mxu0 %v6254_v11 }
 0x129   : > { %5777 = vmatpush3.bf16.msra.mxu0 %v6347_v17  ;;  %5571 = vmatprep.mubr.msk.f32.mxu0 %vm6054_vm0, %v6055_v1 }
 0x130   : > { %5572 = vmatmul.mubr.f32.vlgmr.msra.gmra.mrb[8].mxu0 %v6254_v11 }
 0x153   : > { %v720_v16 = vpop.f32.mrb[0].mxu0 }
 0x154   : > { %v725_v31 = vsel %vm261_vm1, %v720_v16, 0  ;;  %v5237_v20 = vpop.f32.mrb[1].mxu0 }
 0x155   : > { %v794_v43 = vand.u32 4294901760, %v725_v31 }
 0x157   : > { %v795_v45 = vsub.f32 %v725_v31, %v794_v43 }
 0x159   : > { %v796_v49 = vand.u32 4294901760, %v795_v45 }
 0x15b   : > { %v797_v50 = vsub.f32 %v795_v45, %v796_v49 }
 0x15d   : > { %v798_v51 = vand.u32 4294901760, %v797_v50 }
 0x15f   : > { %5243 = vmatmul.mubr.f32.vlgmr.msra.gmra.mrb[0].mxu1 %v798_v51 }
 0x160   : > { %5639 = vmatpush3.bf16.msra.mxu1 %v6435_v47  ;;  %5249 = vmatprep.mubr.msk.f32.mxu1 %vm6054_vm0, %v6055_v1 }
 0x161   : > { %5640 = vmatprep.subr.bf16.mxu1 %v6053_v0 }
 0x167   : > { %5250 = vmatmul.mubr.f32.vlgmr.msra.gmra.mrb[0].mxu1 %v794_v43 }
 0x168   : > { %5642 = vmatpush3.bf16.msra.mxu1 %v6444_v48  ;;  %5256 = vmatprep.mubr.msk.f32.mxu1 %vm6054_vm0, %v6055_v1 }
 0x169   : > { %5643 = vmatprep.subr.bf16.mxu1 %v6053_v0 }
 0x16f   : > { %5257 = vmatmul.mubr.f32.vlgmr.msra.gmra.mrb[0].mxu1 %v795_v45 }
 0x170   : > { %5645 = vmatpush3.bf16.msra.mxu1 %v6425_v19  ;;  %5263 = vmatprep.mubr.msk.f32.mxu1 %vm6054_vm0, %v6055_v1 }
 0x171   : > { %5646 = vmatprep.subr.bf16.mxu1 %v6053_v0 }
 0x177   : > { %5264 = vmatmul.mubr.f32.vlgmr.msra.gmra.mrb[0].mxu1 %v796_v49 }
 0x178   : > { %5648 = vmatpush3.bf16.msra.mxu1 %v6456_v44  ;;  %5270 = vmatprep.mubr.msk.f32.mxu1 %vm6054_vm0, %v6055_v1 }
 0x179   : > { %5649 = vmatprep.subr.bf16.mxu1 %v6053_v0 }
 0x17f   : > { %5271 = vmatmul.mubr.f32.vlgmr.msra.gmra.mrb[0].mxu1 %v794_v43  ;;  %v1642_v11 = vpop.f32.mrb[2].mxu0 }
 0x180   : > { %v1647_v52 = vsel %vm261_vm1, %v1642_v11, 0  ;;  %5651 = vmatpush3.bf16.msra.mxu1 %v6425_v19  ;;  %v5321_v53 = vpop.f32.mrb[3].mxu0  ;;  %5277 = vmatprep.mubr.msk.f32.mxu1 %vm6054_vm0, %v6055_v1 }
 0x181   : > { %v1716_v54 = vand.u32 4294901760, %v1647_v52  ;;  %5670 = vmatprep.subr.bf16.mxu1 %v6053_v0 }
 0x183   : > { %v1717_v55 = vsub.f32 %v1647_v52, %v1716_v54 }
 0x185   : > { %v1718_v56 = vand.u32 4294901760, %v1717_v55 }
 0x187   : > { %v1719_v57 = vsub.f32 %v1717_v55, %v1718_v56  ;;  %5278 = vmatmul.mubr.f32.vlgmr.msra.gmra.mrb[0].mxu1 %v794_v43 }
 0x188   : > { %5672 = vmatpush3.bf16.msra.mxu1 %v6425_v19  ;;  %5326 = vmatprep.mubr.msk.f32.mxu1 %vm6054_vm0, %v6055_v1 }
 0x189   : > { %v1720_v58 = vand.u32 4294901760, %v1719_v57  ;;  %5673 = vmatprep.subr.bf16.mxu1 %v6053_v0 }
 0x18b   : > { %5327 = vmatmul.mubr.f32.vlgmr.msra.gmra.mrb[2].mxu1 %v1720_v58 }
 0x18c   : > { %5675 = vmatpush3.bf16.msra.mxu1 %v6435_v47  ;;  %5333 = vmatprep.mubr.msk.f32.mxu1 %vm6054_vm0, %v6055_v1 }
 0x18d   : > { %5676 = vmatprep.subr.bf16.mxu1 %v6053_v0 }
 0x193   : > { %5334 = vmatmul.mubr.f32.vlgmr.msra.gmra.mrb[2].mxu1 %v1716_v54 }
 0x194   : > { %5678 = vmatpush3.bf16.msra.mxu1 %v6444_v48  ;;  %5340 = vmatprep.mubr.msk.f32.mxu1 %vm6054_vm0, %v6055_v1 }
 0x195   : > { %5679 = vmatprep.subr.bf16.mxu1 %v6053_v0 }
 0x19b   : > { %5341 = vmatmul.mubr.f32.vlgmr.msra.gmra.mrb[2].mxu1 %v1717_v55 }
 0x19c   : > { %5681 = vmatpush3.bf16.msra.mxu1 %v6425_v19  ;;  %5347 = vmatprep.mubr.msk.f32.mxu1 %vm6054_vm0, %v6055_v1 }
 0x19d   : > { %5682 = vmatprep.subr.bf16.mxu1 %v6053_v0 }
 0x1a3   : > { %5348 = vmatmul.mubr.f32.vlgmr.msra.gmra.mrb[2].mxu1 %v1718_v56 }
 0x1a4   : > { %5684 = vmatpush3.bf16.msra.mxu1 %v6456_v44  ;;  %5354 = vmatprep.mubr.msk.f32.mxu1 %vm6054_vm0, %v6055_v1 }
 0x1a5   : > { %5685 = vmatprep.subr.bf16.mxu1 %v6053_v0 }
 0x1ab   : > { %5355 = vmatmul.mubr.f32.vlgmr.msra.gmra.mrb[2].mxu1 %v1716_v54  ;;  %v2566_v59 = vpop.f32.mrb[4].mxu0 }
 0x1ac   : > { %v2571_v60 = vsel %vm261_vm1, %v2566_v59, 0  ;;  %5687 = vmatpush3.bf16.msra.mxu1 %v6425_v19  ;;  %v5405_v61 = vpop.f32.mrb[5].mxu0  ;;  %5361 = vmatprep.mubr.msk.f32.mxu1 %vm6054_vm0, %v6055_v1 }
 0x1ad   : > { %v2640_v62 = vand.u32 4294901760, %v2571_v60  ;;  %5706 = vmatprep.subr.bf16.mxu1 %v6053_v0 }
 0x1af   : > { %v2641_v63 = vsub.f32 %v2571_v60, %v2640_v62 }
 0x1b1   : > { %v2642_v4 = vand.u32 4294901760, %v2641_v63 }
 0x1b3   : > { %v2643_v5 = vsub.f32 %v2641_v63, %v2642_v4  ;;  %5362 = vmatmul.mubr.f32.vlgmr.msra.gmra.mrb[2].mxu1 %v1716_v54 }
 0x1b4   : > { %5708 = vmatpush3.bf16.msra.mxu1 %v6425_v19  ;;  %5410 = vmatprep.mubr.msk.f32.mxu1 %vm6054_vm0, %v6055_v1 }
 0x1b5   : > { %v2644_v6 = vand.u32 4294901760, %v2643_v5  ;;  %5709 = vmatprep.subr.bf16.mxu1 %v6053_v0 }
 0x1b7   : > { %5411 = vmatmul.mubr.f32.vlgmr.msra.gmra.mrb[4].mxu1 %v2644_v6 }
 0x1b8   : > { %5711 = vmatpush3.bf16.msra.mxu1 %v6435_v47  ;;  %5417 = vmatprep.mubr.msk.f32.mxu1 %vm6054_vm0, %v6055_v1 }
 0x1b9   : > { %5712 = vmatprep.subr.bf16.mxu1 %v6053_v0 }
 0x1bf   : > { %5418 = vmatmul.mubr.f32.vlgmr.msra.gmra.mrb[4].mxu1 %v2640_v62 }
 0x1c0   : > { %5714 = vmatpush3.bf16.msra.mxu1 %v6444_v48  ;;  %5424 = vmatprep.mubr.msk.f32.mxu1 %vm6054_vm0, %v6055_v1 }
 0x1c1   : > { %5715 = vmatprep.subr.bf16.mxu1 %v6053_v0 }
 0x1c7   : > { %5425 = vmatmul.mubr.f32.vlgmr.msra.gmra.mrb[4].mxu1 %v2641_v63 }
 0x1c8   : > { %5717 = vmatpush3.bf16.msra.mxu1 %v6425_v19  ;;  %5431 = vmatprep.mubr.msk.f32.mxu1 %vm6054_vm0, %v6055_v1 }
 0x1c9   : > { %5718 = vmatprep.subr.bf16.mxu1 %v6053_v0 }
 0x1cf   : > { %5432 = vmatmul.mubr.f32.vlgmr.msra.gmra.mrb[4].mxu1 %v2642_v4 }
 0x1d0   : > { %5720 = vmatpush3.bf16.msra.mxu1 %v6456_v44  ;;  %5438 = vmatprep.mubr.msk.f32.mxu1 %vm6054_vm0, %v6055_v1 }
 0x1d1   : > { %5721 = vmatprep.subr.bf16.mxu1 %v6053_v0 }
 0x1d7   : > { %5439 = vmatmul.mubr.f32.vlgmr.msra.gmra.mrb[4].mxu1 %v2640_v62  ;;  %v3490_v7 = vpop.f32.mrb[6].mxu0 }
 0x1d8   : > { %v3495_v8 = vsel %vm261_vm1, %v3490_v7, 0  ;;  %5723 = vmatpush3.bf16.msra.mxu1 %v6425_v19  ;;  %v5489_v9 = vpop.f32.mrb[7].mxu0  ;;  %5445 = vmatprep.mubr.msk.f32.mxu1 %vm6054_vm0, %v6055_v1 }
 0x1d9   : > { %v3564_v10 = vand.u32 4294901760, %v3495_v8  ;;  %5742 = vmatprep.subr.bf16.mxu1 %v6053_v0 }
 0x1db   : > { %v3565_v12 = vsub.f32 %v3495_v8, %v3564_v10 }
 0x1dd   : > { %v3566_v13 = vand.u32 4294901760, %v3565_v12 }
 0x1df   : > { %v3567_v14 = vsub.f32 %v3565_v12, %v3566_v13  ;;  %5446 = vmatmul.mubr.f32.vlgmr.msra.gmra.mrb[4].mxu1 %v2640_v62 }
 0x1e0   : > { %5744 = vmatpush3.bf16.msra.mxu1 %v6425_v19  ;;  %5494 = vmatprep.mubr.msk.f32.mxu1 %vm6054_vm0, %v6055_v1 }
 0x1e1   : > { %v3568_v15 = vand.u32 4294901760, %v3567_v14  ;;  %5745 = vmatprep.subr.bf16.mxu1 %v6053_v0 }
 0x1e3   : > { %5495 = vmatmul.mubr.f32.vlgmr.msra.gmra.mrb[6].mxu1 %v3568_v15 }
 0x1e4   : > { %5747 = vmatpush3.bf16.msra.mxu1 %v6435_v47  ;;  %5501 = vmatprep.mubr.msk.f32.mxu1 %vm6054_vm0, %v6055_v1 }
 0x1e5   : > { %5748 = vmatprep.subr.bf16.mxu1 %v6053_v0 }
 0x1eb   : > { %5502 = vmatmul.mubr.f32.vlgmr.msra.gmra.mrb[6].mxu1 %v3564_v10 }
 0x1ec   : > { %5750 = vmatpush3.bf16.msra.mxu1 %v6444_v48  ;;  %5508 = vmatprep.mubr.msk.f32.mxu1 %vm6054_vm0, %v6055_v1 }
 0x1ed   : > { %5751 = vmatprep.subr.bf16.mxu1 %v6053_v0 }
 0x1f3   : > { %5509 = vmatmul.mubr.f32.vlgmr.msra.gmra.mrb[6].mxu1 %v3565_v12 }
 0x1f4   : > { %5753 = vmatpush3.bf16.msra.mxu1 %v6425_v19  ;;  %5515 = vmatprep.mubr.msk.f32.mxu1 %vm6054_vm0, %v6055_v1 }
 0x1f5   : > { %5754 = vmatprep.subr.bf16.mxu1 %v6053_v0 }
 0x1fb   : > { %5516 = vmatmul.mubr.f32.vlgmr.msra.gmra.mrb[6].mxu1 %v3566_v13 }
 0x1fc   : > { %5756 = vmatpush3.bf16.msra.mxu1 %v6456_v44  ;;  %5522 = vmatprep.mubr.msk.f32.mxu1 %vm6054_vm0, %v6055_v1 }
 0x1fd   : > { %5757 = vmatprep.subr.bf16.mxu1 %v6053_v0 }
 0x203   : > { %5523 = vmatmul.mubr.f32.vlgmr.msra.gmra.mrb[6].mxu1 %v3564_v10  ;;  %v4414_v17 = vpop.f32.mrb[8].mxu0 }
 0x204   : > { %v4419_v18 = vsel %vm261_vm1, %v4414_v17, 0  ;;  %5759 = vmatpush3.bf16.msra.mxu1 %v6425_v19  ;;  %v5573_v21 = vpop.f32.mrb[9].mxu0  ;;  %5529 = vmatprep.mubr.msk.f32.mxu1 %vm6054_vm0, %v6055_v1 }
 0x205   : > { %v4488_v2 = vand.u32 4294901760, %v4419_v18  ;;  %5778 = vmatprep.subr.bf16.mxu1 %v6053_v0 }
 0x207   : > { %v4489_v3 = vsub.f32 %v4419_v18, %v4488_v2 }
 0x209   : > { %v4490_v22 = vand.u32 4294901760, %v4489_v3 }
 0x20b   : > { %v4491_v24 = vsub.f32 %v4489_v3, %v4490_v22  ;;  %5530 = vmatmul.mubr.f32.vlgmr.msra.gmra.mrb[6].mxu1 %v3564_v10 }
 0x20c   : > { %5780 = vmatpush3.bf16.msra.mxu1 %v6425_v19  ;;  %5578 = vmatprep.mubr.msk.f32.mxu1 %vm6054_vm0, %v6055_v1 }
 0x20d   : > { %v4492_v25 = vand.u32 4294901760, %v4491_v24  ;;  %5781 = vmatprep.subr.bf16.mxu1 %v6053_v0 }
 0x20f   : > { %5579 = vmatmul.mubr.f32.vlgmr.msra.gmra.mrb[8].mxu1 %v4492_v25 }
 0x210   : > { %5783 = vmatpush3.bf16.msra.mxu1 %v6435_v47  ;;  %5585 = vmatprep.mubr.msk.f32.mxu1 %vm6054_vm0, %v6055_v1 }
 0x211   : > { %5784 = vmatprep.subr.bf16.mxu1 %v6053_v0 }
 0x217   : > { %5586 = vmatmul.mubr.f32.vlgmr.msra.gmra.mrb[8].mxu1 %v4488_v2 }
 0x218   : > { %5786 = vmatpush3.bf16.msra.mxu1 %v6444_v48  ;;  %5592 = vmatprep.mubr.msk.f32.mxu1 %vm6054_vm0, %v6055_v1  ;;  %v4899_v48 = vlaneseq }
 0x219   : > { %5787 = vmatprep.subr.bf16.mxu1 %v6053_v0 }
 0x21a   : > { %v4900_v45 = vshrl.u32 %v4899_v48, 7  ;;  %v4902_v49 = vand.u32 127, %v4899_v48 }
 0x21c   : > { %vm4903_vm2 = vcmp.lt.s32.totalorder %v4900_v45, 1  ;;  %vm4904_vm3 = vcmp.lt.s32.totalorder %v4902_v49, 1 }
 0x21d   : > { %vm4905_vm4 = vmand %vm4903_vm2, %vm4904_vm3 }
 0x21f   : > { %5593 = vmatmul.mubr.f32.vlgmr.msra.gmra.mrb[8].mxu1 %v4489_v3 }
 0x220   : > { %5789 = vmatpush3.bf16.msra.mxu1 %v6425_v19  ;;  %5599 = vmatprep.mubr.msk.f32.mxu1 %vm6054_vm0, %v6055_v1 }
 0x221   : > { %5790 = vmatprep.subr.bf16.mxu1 %v6053_v0 }
 0x227   : > { %5600 = vmatmul.mubr.f32.vlgmr.msra.gmra.mrb[8].mxu1 %v4490_v22 }
 0x228   : > { %5792 = vmatpush3.bf16.msra.mxu1 %v6456_v44  ;;  %5606 = vmatprep.mubr.msk.f32.mxu1 %vm6054_vm0, %v6055_v1 }
 0x229   : > { %5793 = vmatprep.subr.bf16.mxu1 %v6053_v0 }
 0x22f   : > { %5607 = vmatmul.mubr.f32.vlgmr.msra.gmra.mrb[8].mxu1 %v4488_v2 }
 0x230   : > { %5795 = vmatpush3.bf16.msra.mxu1 %v6425_v19  ;;  %5613 = vmatprep.mubr.msk.f32.mxu1 %vm6054_vm0, %v6055_v1 }
 0x237   : > { %5614 = vmatmul.mubr.f32.vlgmr.msra.gmra.mrb[8].mxu1 %v4488_v2 }
 0x25a   : > { %v1182_v26 = vpop.f32.mrb[0].mxu1 }
 0x25b   : > { %v5279_v27 = vpop.f32.mrb[1].mxu1  ;;  %v1186_v28 = vmul.f32 0.008264462, %v1182_v26 }
 0x25d   : > { %v4881_v23 = vmul.f32 %v1186_v28, %v1186_v28 }
 0x286   : > { %v2104_v30 = vpop.f32.mrb[2].mxu1 }
 0x287   : > { %v2108_v32 = vmul.f32 0.008264462, %v2104_v30  ;;  %v5363_v33 = vpop.f32.mrb[3].mxu1 }
 0x289   : > { %v4882_v29 = vmul.f32 %v2108_v32, %v2108_v32  ;;  %v4883_v34 = vmul.f32 %v2108_v32, %v1186_v28 }
 0x28b   : > { %v4892_v35 = vadd.f32 %v4882_v29, %v4881_v23  ;;  %v4887_v20 = vmul.f32 2.0, %v4883_v34 }
 0x28d   : > { %v4893_v42 = vadd.f32 0.0001, %v4892_v35  ;;  %v4888_v51 = vadd.f32 0.0001, %v4887_v20 }
 0x2b2   : > { %v3028_v36 = vpop.f32.mrb[4].mxu1 }
 0x2b3   : > { %v3032_v37 = vmul.f32 0.008264462, %v3028_v36  ;;  %v5447_v0 = vpop.f32.mrb[5].mxu1 }
 0x2b5   : > { %v4884_v38 = vsub.f32 %v3032_v37, %v4881_v23 }
 0x2de   : > { %v3952_v39 = vpop.f32.mrb[6].mxu1 }
 0x2df   : > { %v3956_v19 = vmul.f32 0.008264462, %v3952_v39  ;;  %v5531_v40 = vpop.f32.mrb[7].mxu1 }
 0x2e1   : > { %v4885_v41 = vsub.f32 %v3956_v19, %v4882_v29 }
 0x2e3   : > { %v4894_v1 = vadd.f32 %v4885_v41, %v4884_v38 }
 0x2e5   : > { %v4895_v46 = vadd.f32 0.0009, %v4894_v1 }
 0x2e7   : > { %v4896_v47 = vmul.f32 %v4895_v46, %v4893_v42 }
 0x2e9   : > { %5947 = vrcp.f32 %v4896_v47 }
 0x2f3   : > { %v5948_v53 = vpop.eup %5947 }
 0x30a   : > { %v4876_v44 = vpop.f32.mrb[8].mxu1 }
 0x30b   : > { %v4880_v16 = vmul.f32 0.008264462, %v4876_v44  ;;  %v5615_v31 = vpop.f32.mrb[9].mxu1 }
 0x30d   : > { %v4886_v43 = vsub.f32 %v4880_v16, %v4883_v34 }
 0x30f   : > { %v4889_v50 = vmul.f32 2.0, %v4886_v43 }
 0x311   : > { %v4890_v11 = vadd.f32 0.0009, %v4889_v50 }
 0x313   : > { %v4891_v52 = vmul.f32 %v4890_v11, %v4888_v51 }
 0x315   : > { %v4898_v54 = vmul.f32 %v5948_v53, %v4891_v52 }
 0x317   : > { %v4906_v55 = vsel %vm4905_vm4, %v4898_v54, 0.0 }
 0x318   : > { %4907 = vadd.xlane.f32.xlu0 %v4906_v55 }
 0x3a5   : > { %v4908_v56 = vpop.xlane.xlu0 %4907 }
 0x3a6   : > { %v4909_v57 = vrot.slane %v4908_v56, 4 }
 0x3a8   : > { %v4910_v58 = vadd.f32 %v4909_v57, %v4908_v56 }
 0x3aa   : > { %v4911_v59 = vrot.slane %v4910_v58, 2 }
 0x3ac   : > { %v4912_v60 = vadd.f32 %v4911_v59, %v4910_v58 }
 0x3ae   : > { %v4913_v61 = vrot.slane %v4912_v60, 1 }
 0x3b0   : > { %v4914_v62 = vadd.f32 %v4913_v61, %v4912_v60 }
 0x3b2   : > { %5896 = vpush %v4914_v62 }
 0x3e3   : > { %s5897_s15 = spop %5896 }
 0x3e4   : > { %v4916_v63 = vstv %s5897_s15 }
 0x3e5   : > { %4917 = vst [vmem:[%s253_s8] sm:$0x1] %v4916_v63 }
 0x3e6 PF: > { %p17_p11 = scmp.ge.s32.totalorder %s6103_s20, 10   ;;  %s6644_s15 = smov %s6039_s16 }
 0x3e7   : > { %s6645_s16 = smov %s6043_s17  ;;  %s6646_s17 = smov %s6113_s23 }
 0x3e8   : > { %s6647_s18 = smov %s6103_s20  ;;  %19 = sbr.rel (!%p17_p11) target bundleno = 5 (0x5), region = 89 }
 0x3ef   :  { %4935 = vsyncpa [#allocation3], 1 }
 0x3f0   :  { %4937 = vsyncpa [#allocation3 + $0x1], 1 }
 0x3f1   :  { %4938 = vsyncpa [#allocation5], 1 }
 0x3f2   :  { %4940 = vsyncpa [#allocation5 + $0x1], 1 }

</bundles_post_ra>
